<compile_context>
chip_gen: v6e
topology: v6e:2x2x1
jax: 0.10.0
libtpu: 0.0.40
codegen_flags: <defaults>
</compile_context>

<pallas_src>
import functools

import jax
import jax.numpy as jnp
from jax.experimental import pallas as pl
from jax.experimental.pallas import tpu as pltpu


def _round_up(v, m):
    return ((v + m - 1) // m) * m


def _pick_tile(n, target):
    """Largest multiple-of-128 tile <= target that divides n (n mult of 128)."""
    t = min(target, n)
    while n % t != 0:
        t -= 128
    return t


def _pad2d(x, rows, cols):
    r, c = x.shape
    return jnp.pad(x, ((0, rows - r), (0, cols - c)))


# ---------------------------------------------------------------------------
# Kernel 1: XW' = (X @ W) * D^{-1/2}   (right normalization folded in, f32 out)
# ---------------------------------------------------------------------------
def _xw_kernel(x_ref, w_ref, dinv_ref, o_ref):
    xw = jnp.dot(x_ref[...], w_ref[...], preferred_element_type=jnp.float32)
    o_ref[...] = xw * dinv_ref[...]            # (tm, 1) row-scale broadcasts


# ---------------------------------------------------------------------------
# Kernel 2: out = relu(D^{-1/2} * ((A+I) @ XW') + b)
#   A tiles arrive as int8 (exact edge counts), cast to bf16 on-chip.
#   Accumulation goes straight into the f32 output block (resident across k).
# ---------------------------------------------------------------------------
def _agg_kernel(a_ref, xw_ref, dinv_ref, b_ref, o_ref, *, tk, xw_resident):
    k = pl.program_id(1)

    @pl.when(k == 0)
    def _():
        o_ref[...] = jnp.zeros_like(o_ref)

    a = a_ref[...].astype(jnp.bfloat16)                    # exact 0/1/count
    if xw_resident:
        start = pl.multiple_of(k * tk, 128)
        xw = xw_ref[pl.ds(start, tk), :]
    else:
        xw = xw_ref[...]
    o_ref[...] += jnp.dot(a, xw.astype(jnp.bfloat16),
                          preferred_element_type=jnp.float32)

    @pl.when(k == pl.num_programs(1) - 1)
    def _():
        out = o_ref[...] * dinv_ref[...] + b_ref[...]      # left D^{-1/2}, bias
        o_ref[...] = jnp.maximum(out, 0.0)


@functools.partial(jax.jit, static_argnames=("num_nodes",))
def gcn_forward(x, edge_index, weight, bias, *, num_nodes):
    """GCN forward. x:[N,F_in] f32, edge_index:[2,E] int32 (row=src, col=dst)."""
    N = num_nodes
    F_in = x.shape[1]
    F_out = weight.shape[1]

    # --- tile / padding choices (pad N to a multiple of the target tile) ----
    n128 = _round_up(N, 128)
    if n128 >= 2048:
        tm, tk = 1024, 2048
        Np = _round_up(N, 2048)
    elif n128 >= 1024:
        Np = _round_up(N, 1024)
        tm, tk = 1024, Np
    else:
        Np = n128
        tm = tk = Np
    Fip = _round_up(F_in, 128)
    Fop = _round_up(F_out, 128)

    # --- gcn_norm glue (add_self_loops=True, improved=False) ----------------
    loop = jnp.arange(N, dtype=edge_index.dtype)
    row = jnp.concatenate([edge_index[0], loop])           # source
    col = jnp.concatenate([edge_index[1], loop])           # destination
    deg = jnp.zeros((N,), jnp.float32).at[col].add(
        jnp.ones(row.shape, jnp.float32))
    dinv = jnp.where(deg > 0, jax.lax.rsqrt(jnp.maximum(deg, 1.0)), 0.0)
    dinv_p = jnp.zeros((Np, 1), jnp.float32).at[:N, 0].set(dinv)

    # Unnormalized adjacency with self loops, scattered ONCE into a
    # pre-padded int8 buffer: A_sl[i, j] = #edges j->i (exact small ints).
    a_i8 = jnp.zeros((Np, Np), jnp.int8).at[col, row].add(
        jnp.ones(row.shape, jnp.int8))

    x_p = _pad2d(x.astype(jnp.float32), Np, Fip)
    w_p = _pad2d(weight.astype(jnp.float32), Fip, Fop)
    b_p = _pad2d(bias.reshape(1, F_out).astype(jnp.float32), 1, Fop)

    # --- kernel 1: XW' = (X @ W) * D^{-1/2}  (f32, tiny traffic) ------------
    tmx = _pick_tile(Np, 512)
    xw_vmem = 2 * (tmx * Fip + Fip * Fop + tmx * Fop) * 4 + (4 << 20)
    xw = pl.pallas_call(
        _xw_kernel,
        out_shape=jax.ShapeDtypeStruct((Np, Fop), jnp.float32),
        grid_spec=pltpu.PrefetchScalarGridSpec(
            num_scalar_prefetch=0,
            grid=(Np // tmx,),
            in_specs=[
                pl.BlockSpec((tmx, Fip), lambda i: (i, 0)),
                pl.BlockSpec((Fip, Fop), lambda i: (0, 0)),
                pl.BlockSpec((tmx, 1), lambda i: (i, 0)),
            ],
            out_specs=pl.BlockSpec((tmx, Fop), lambda i: (i, 0)),
        ),
        compiler_params=pltpu.CompilerParams(
            dimension_semantics=("parallel",),
            vmem_limit_bytes=min(48 << 20, max(16 << 20, xw_vmem)),
        ),
        cost_estimate=pl.CostEstimate(
            flops=2 * Np * Fip * Fop,
            transcendentals=0,
            bytes_accessed=4 * (Np * Fip + Fip * Fop + Np * Fop),
        ),
    )(x_p, w_p, dinv_p)

    # --- kernel 2: out = relu(D^{-1/2} ((A+I) @ XW') + b) -------------------
    # Keep XW' resident in VMEM (DMA'd exactly once) when it fits comfortably.
    xw_resident = (Np * Fop * 4) <= (8 << 20)
    if xw_resident:
        xw_spec = pl.BlockSpec((Np, Fop), lambda i, k: (0, 0))
        xw_buf_bytes = 2 * Np * Fop * 4
    else:
        xw_spec = pl.BlockSpec((tk, Fop), lambda i, k: (k, 0))
        xw_buf_bytes = 2 * tk * Fop * 4
    agg_footprint = (2 * tm * tk                 # int8 A tiles, double-buffered
                     + xw_buf_bytes
                     + 2 * tm * Fop * 4          # resident f32 output block
                     + 2 * tm * 4 + 2 * Fop * 4)
    agg_vmem = min(48 << 20, max(16 << 20, agg_footprint + (8 << 20)))

    out_p = pl.pallas_call(
        functools.partial(_agg_kernel, tk=tk, xw_resident=xw_resident),
        out_shape=jax.ShapeDtypeStruct((Np, Fop), jnp.float32),
        grid_spec=pltpu.PrefetchScalarGridSpec(
            num_scalar_prefetch=0,
            grid=(Np // tm, Np // tk),
            in_specs=[
                pl.BlockSpec((tm, tk), lambda i, k: (i, k)),    # int8 A stream
                xw_spec,                                         # XW' (f32)
                pl.BlockSpec((tm, 1), lambda i, k: (i, 0)),      # left D^{-1/2}
                pl.BlockSpec((1, Fop), lambda i, k: (0, 0)),     # bias
            ],
            out_specs=pl.BlockSpec((tm, Fop), lambda i, k: (i, 0)),
        ),
        compiler_params=pltpu.CompilerParams(
            dimension_semantics=("parallel", "arbitrary"),
            vmem_limit_bytes=agg_vmem,
        ),
        cost_estimate=pl.CostEstimate(
            flops=2 * Np * Np * Fop + 2 * Np * Fop,
            transcendentals=0,
            bytes_accessed=Np * Np + 4 * (2 * Np * Fop + Np + Fop),
        ),
    )(a_i8, xw, dinv_p, b_p)

    # strip padding; dropout(p=0.0) is a no-op
    return out_p[:N, :F_out]


def _reference(x, edge_index, weight, bias, num_nodes):
    N = num_nodes
    loop = jnp.arange(N, dtype=edge_index.dtype)
    row = jnp.concatenate([edge_index[0], loop])
    col = jnp.concatenate([edge_index[1], loop])
    ew = jnp.ones(row.shape, jnp.float32)
    deg = jnp.zeros((N,), jnp.float32).at[col].add(ew)
    dinv = jnp.where(deg > 0, 1.0 / jnp.sqrt(jnp.maximum(deg, 1.0)), 0.0)
    norm = dinv[row] * ew * dinv[col]
    a = jnp.zeros((N, N), jnp.float32).at[col, row].add(norm)
    h = a @ (x @ weight) + bias.reshape(1, -1)
    return jnp.maximum(h, 0.0)


if __name__ == "__main__":
    N, E = 32, 64          # nodes, edges
    in_feat, out_feat = 16, 16

    key = jax.random.PRNGKey(0)
    kx, ke1, ke2, kw = jax.random.split(key, 4)

    x = jax.random.normal(kx, (N, in_feat), dtype=jnp.float32)
    src = jax.random.randint(ke1, (E,), 0, N, dtype=jnp.int32)
    dst = jax.random.randint(ke2, (E,), 0, N, dtype=jnp.int32)
    edge_index = jnp.stack([src, dst], axis=0)                 # [2, E]

    # GCNConv params: lin.weight [F_in, F_out] (no lin bias), conv bias [F_out]
    weight = jax.random.normal(kw, (in_feat, out_feat), dtype=jnp.float32) * 0.1
    bias = jnp.full((out_feat,), 0.05, dtype=jnp.float32)

    out = gcn_forward(x, edge_index, weight, bias, num_nodes=N)
    out = jax.block_until_ready(out)

    ref = _reference(x, edge_index, weight, bias, N)
    assert out.shape == (N, out_feat)
    # Streamed adjacency is exact int8; only XW is rounded to bf16 at the MXU.
    assert jnp.allclose(out, ref, atol=2e-2, rtol=2e-2), "mismatch vs reference"

    print("KERNEL_OK")
</pallas_src>

<mosaic_0001>
module attributes {stable_mosaic.version = 11 : i64} {
  func.func private @main(%arg0: i32) attributes {dimension_semantics = [#tpu.dimension_semantics<core_parallel>], iteration_bounds = array<i64: 2>, tpu.core_type = #tpu.core_type<sc_scalar_subcore>, window_params = []} {
    return
  }
}

module attributes {stable_mosaic.version = 11 : i64} {
  func.func private @main(%arg0: i32) attributes {dimension_semantics = [#tpu.dimension_semantics<core_parallel>], iteration_bounds = array<i64: 2>, tpu.core_type = #tpu.core_type<sc_scalar_subcore>, window_params = []} {
    return
  }
}

module attributes {stable_mosaic.version = 11 : i64} {
  func.func @_xw_kernel(%arg0: i32, %arg1: memref<128x128xf32, #tpu.memory_space<vmem>>, %arg2: memref<128x128xf32, #tpu.memory_space<vmem>>, %arg3: memref<128x1xf32, #tpu.memory_space<vmem>>, %arg4: memref<128x128xf32, #tpu.memory_space<vmem>>) attributes {dimension_semantics = [#tpu.dimension_semantics<parallel>], iteration_bounds = array<i64: 1>, scalar_prefetch = 0 : i64, scratch_operands = 0 : i64, tpu.core_type = #tpu.core_type<tc>, window_params = [{transform_indices = @transform_0, window_bounds = array<i64: 128, 128>}, {pipeline_mode = #tpu.pipeline_mode<synchronous>, transform_indices = @transform_1, window_bounds = array<i64: 128, 128>}, {transform_indices = @transform_2, window_bounds = array<i64: 128, 1>}, {transform_indices = @transform_3, window_bounds = array<i64: 128, 128>}]} {
    %c0 = arith.constant 0 : index
    %c0_0 = arith.constant 0 : index
    %0 = vector.load %arg1[%c0, %c0_0] : memref<128x128xf32, #tpu.memory_space<vmem>>, vector<128x128xf32>
    %c0_1 = arith.constant 0 : index
    %c0_2 = arith.constant 0 : index
    %1 = vector.load %arg2[%c0_1, %c0_2] : memref<128x128xf32, #tpu.memory_space<vmem>>, vector<128x128xf32>
    %cst = arith.constant dense<0.000000e+00> : vector<128x128xf32>
    %2 = tpu.matmul %0, %1, %cst {dimension_numbers = #tpu.dot_dimension_numbers<[1], [0], [0], [1], [0, 0, 1, 1], [], []>} : vector<128x128xf32>, vector<128x128xf32>, vector<128x128xf32> -> vector<128x128xf32>
    %c0_3 = arith.constant 0 : index
    %c0_4 = arith.constant 0 : index
    %3 = vector.load %arg3[%c0_3, %c0_4] : memref<128x1xf32, #tpu.memory_space<vmem>>, vector<128x1xf32>
    %4 = vector.broadcast %3 : vector<128x1xf32> to vector<128x128xf32>
    %5 = arith.mulf %2, %4 : vector<128x128xf32>
    %c0_5 = arith.constant 0 : index
    %c0_6 = arith.constant 0 : index
    %6 = vector.load %arg4[%c0_5, %c0_6] : memref<128x128xf32, #tpu.memory_space<vmem>>, vector<128x128xf32>
    tpu.vector_store %arg4[%c0_5, %c0_6], %5 {strides = array<i32>} : memref<128x128xf32, #tpu.memory_space<vmem>>, vector<128x128xf32>,
    return
  }
  func.func @transform_0(%arg0: i32) -> (i32, i32) {
    %c0_i32 = arith.constant 0 : i32
    %c0_i32_0 = arith.constant 0 : i32
    return %arg0, %c0_i32 : i32, i32
  }
  func.func @transform_1(%arg0: i32) -> (i32, i32) {
    %c0_i32 = arith.constant 0 : i32
    %c0_i32_0 = arith.constant 0 : i32
    %c0_i32_1 = arith.constant 0 : i32
    return %c0_i32, %c0_i32_0 : i32, i32
  }
  func.func @transform_2(%arg0: i32) -> (i32, i32) {
    %c0_i32 = arith.constant 0 : i32
    %c0_i32_0 = arith.constant 0 : i32
    return %arg0, %c0_i32 : i32, i32
  }
  func.func @transform_3(%arg0: i32) -> (i32, i32) {
    %c0_i32 = arith.constant 0 : i32
    %c0_i32_0 = arith.constant 0 : i32
    return %arg0, %c0_i32 : i32, i32
  }
}

module attributes {stable_mosaic.version = 11 : i64} {
  func.func @_agg_kernel(%arg0: i32, %arg1: i32, %arg2: memref<128x128xi8, #tpu.memory_space<vmem>>, %arg3: memref<128x128xf32, #tpu.memory_space<vmem>>, %arg4: memref<128x1xf32, #tpu.memory_space<vmem>>, %arg5: memref<1x128xf32, #tpu.memory_space<vmem>>, %arg6: memref<128x128xf32, #tpu.memory_space<vmem>>) attributes {dimension_semantics = [#tpu.dimension_semantics<parallel>, #tpu.dimension_semantics<arbitrary>], iteration_bounds = array<i64: 1, 1>, scalar_prefetch = 0 : i64, scratch_operands = 0 : i64, tpu.core_type = #tpu.core_type<tc>, window_params = [{transform_indices = @transform_0, window_bounds = array<i64: 128, 128>}, {pipeline_mode = #tpu.pipeline_mode<synchronous>, transform_indices = @transform_1, window_bounds = array<i64: 128, 128>}, {transform_indices = @transform_2, window_bounds = array<i64: 128, 1>}, {pipeline_mode = #tpu.pipeline_mode<synchronous>, transform_indices = @transform_3, window_bounds = array<i64: 1, 128>}, {transform_indices = @transform_4, window_bounds = array<i64: 128, 128>}]} {
    %c0_i32 = arith.constant 0 : i32
    %0 = arith.cmpi eq, %arg1, %c0_i32 : i32
    %1 = arith.extui %0 : i1 to i32
    %c0_i32_0 = arith.constant 0 : i32
    %2 = arith.cmpi ne, %1, %c0_i32_0 : i32
    scf.if %2 {
      %cst_9 = arith.constant 0.000000e+00 : f32
      %17 = vector.broadcast %cst_9 : f32 to vector<128x128xf32>
      %c0_10 = arith.constant 0 : index
      %c0_11 = arith.constant 0 : index
      %18 = vector.load %arg6[%c0_10, %c0_11] : memref<128x128xf32, #tpu.memory_space<vmem>>, vector<128x128xf32>
      tpu.vector_store %arg6[%c0_10, %c0_11], %17 {strides = array<i32>} : memref<128x128xf32, #tpu.memory_space<vmem>>, vector<128x128xf32>,
    } else {
    }
    %c0 = arith.constant 0 : index
    %c0_1 = arith.constant 0 : index
    %3 = vector.load %arg2[%c0, %c0_1] : memref<128x128xi8, #tpu.memory_space<vmem>>, vector<128x128xi8>
    %4 = arith.sitofp %3 : vector<128x128xi8> to vector<128x128xbf16>
    %c128_i32 = arith.constant 128 : i32
    %5 = arith.muli %arg1, %c128_i32 : i32
    %6 = tpu.assume_multiple %5, 128 : i32
    %7 = arith.index_cast %6 : i32 to index
    %c0_2 = arith.constant 0 : index
    %8 = vector.load %arg3[%7, %c0_2] : memref<128x128xf32, #tpu.memory_space<vmem>>, vector<128x128xf32>
    %c0_3 = arith.constant 0 : index
    %c0_4 = arith.constant 0 : index
    %9 = vector.load %arg6[%c0_3, %c0_4] : memref<128x128xf32, #tpu.memory_space<vmem>>, vector<128x128xf32>
    %10 = arith.truncf %8 : vector<128x128xf32> to vector<128x128xbf16>
    %cst = arith.constant dense<0.000000e+00> : vector<128x128xf32>
    %11 = tpu.matmul %4, %10, %cst {dimension_numbers = #tpu.dot_dimension_numbers<[1], [0], [0], [1], [0, 0, 1, 1], [], []>} : vector<128x128xbf16>, vector<128x128xbf16>, vector<128x128xf32> -> vector<128x128xf32>
    %12 = arith.addf %9, %11 : vector<128x128xf32>
    %c0_5 = arith.constant 0 : index
    %c0_6 = arith.constant 0 : index
    %13 = vector.load %arg6[%c0_5, %c0_6] : memref<128x128xf32, #tpu.memory_space<vmem>>, vector<128x128xf32>
    tpu.vector_store %arg6[%c0_5, %c0_6], %12 {strides = array<i32>} : memref<128x128xf32, #tpu.memory_space<vmem>>, vector<128x128xf32>,
    %c0_i32_7 = arith.constant 0 : i32
    %14 = arith.cmpi eq, %arg1, %c0_i32_7 : i32
    %15 = arith.extui %14 : i1 to i32
    %c0_i32_8 = arith.constant 0 : i32
    %16 = arith.cmpi ne, %15, %c0_i32_8 : i32
    scf.if %16 {
      %c0_9 = arith.constant 0 : index
      %c0_10 = arith.constant 0 : index
      %17 = vector.load %arg6[%c0_9, %c0_10] : memref<128x128xf32, #tpu.memory_space<vmem>>, vector<128x128xf32>
      %c0_11 = arith.constant 0 : index
      %c0_12 = arith.constant 0 : index
      %18 = vector.load %arg4[%c0_11, %c0_12] : memref<128x1xf32, #tpu.memory_space<vmem>>, vector<128x1xf32>
      %19 = vector.broadcast %18 : vector<128x1xf32> to vector<128x128xf32>
      %20 = arith.mulf %17, %19 : vector<128x128xf32>
      %c0_13 = arith.constant 0 : index
      %c0_14 = arith.constant 0 : index
      %21 = vector.load %arg5[%c0_13, %c0_14] : memref<1x128xf32, #tpu.memory_space<vmem>>, vector<1x128xf32>
      %22 = vector.broadcast %21 : vector<1x128xf32> to vector<128x128xf32>
      %23 = arith.addf %20, %22 : vector<128x128xf32>
      %cst_15 = arith.constant 0.000000e+00 : f32
      %24 = vector.broadcast %cst_15 : f32 to vector<128x128xf32>
      %25 = arith.maximumf %23, %24 : vector<128x128xf32>
      %c0_16 = arith.constant 0 : index
      %c0_17 = arith.constant 0 : index
      %26 = vector.load %arg6[%c0_16, %c0_17] : memref<128x128xf32, #tpu.memory_space<vmem>>, vector<128x128xf32>
      tpu.vector_store %arg6[%c0_16, %c0_17], %25 {strides = array<i32>} : memref<128x128xf32, #tpu.memory_space<vmem>>, vector<128x128xf32>,
    } else {
    }
    return
  }
  func.func @transform_0(%arg0: i32, %arg1: i32) -> (i32, i32) {
    %c0_i32 = arith.constant 0 : i32
    return %arg0, %arg1 : i32, i32
  }
  func.func @transform_1(%arg0: i32, %arg1: i32) -> (i32, i32) {
    %c0_i32 = arith.constant 0 : i32
    %c0_i32_0 = arith.constant 0 : i32
    %c0_i32_1 = arith.constant 0 : i32
    return %c0_i32, %c0_i32_0 : i32, i32
  }
  func.func @transform_2(%arg0: i32, %arg1: i32) -> (i32, i32) {
    %c0_i32 = arith.constant 0 : i32
    %c0_i32_0 = arith.constant 0 : i32
    return %arg0, %c0_i32 : i32, i32
  }
  func.func @transform_3(%arg0: i32, %arg1: i32) -> (i32, i32) {
    %c0_i32 = arith.constant 0 : i32
    %c0_i32_0 = arith.constant 0 : i32
    %c0_i32_1 = arith.constant 0 : i32
    return %c0_i32, %c0_i32_0 : i32, i32
  }
  func.func @transform_4(%arg0: i32, %arg1: i32) -> (i32, i32) {
    %c0_i32 = arith.constant 0 : i32
    %c0_i32_0 = arith.constant 0 : i32
    return %arg0, %c0_i32 : i32, i32
  }
}

</mosaic_0001>

<bundles_post_ra>
// kernel: gcn_forward.2
= control target key start
LH: loop header
LB: loop body
LE: loop exit
PB: predicated region body
PF: predicated region fallthrough
CT: control target
= control target key end

     0   :  { %v446_v2 = vmov 0   ;;  %s659_s1 = inlined_call_operand.vmem [shape: f32[128,128], index: 1, kind: input, shape index: {}]   ;;  %s660_s0 = inlined_call_operand.vmem [shape: f32[128,128], index: 0, kind: input, shape index: {}]   ;;  %s661_s2 = inlined_call_operand.vmem [shape: f32[128,1], index: 2, kind: input, shape index: {}]   ;;  %s662_s3 = inlined_call_operand.vmem [shape: f32[128,128], index: 3, kind: output, shape index: {}]  }
   0x1   :  { %v45_v0 = vld [vmem:[%s659_s1 + $0x78] sm:$0xff]  ;;  %v44_v1 = vld [vmem:[%s659_s1 + $0x70] sm:$0xff]  ;;  %445 = vset.pattern.permute.xlu1 %v446_v2  ;;  %444 = vset.pattern.permute.xlu0 %v446_v2  ;;  %v43_v3 = vld [vmem:[%s659_s1 + $0x68] sm:$0xff] }
   0x2   :  { %355 = vmatprep.subr.mxu0 %v45_v0  ;;  %411 = vmatprep.subr.mxu1 %v45_v0  ;;  %v42_v4 = vld [vmem:[%s659_s1 + $0x60] sm:$0xff]  ;;  %v41_v5 = vld [vmem:[%s659_s1 + $0x58] sm:$0xff]  ;;  %v40_v6 = vld [vmem:[%s659_s1 + $0x50] sm:$0xff] }
   0x3   :  { %356 = vmatpush3.msra.mxu0 %v45_v0  ;;  %427 = vmatpush3.msra.mxu1 %v45_v0  ;;  %v39_v7 = vld [vmem:[%s659_s1 + $0x48] sm:$0xff]  ;;  %v38_v8 = vld [vmem:[%s659_s1 + $0x40] sm:$0xff]  ;;  %v37_v9 = vld [vmem:[%s659_s1 + $0x38] sm:$0xff] }
   0x4   :  { %357 = vmatprep.subr.mxu0 %v44_v1  ;;  %412 = vmatprep.subr.mxu1 %v44_v1  ;;  %v36_v10 = vld [vmem:[%s659_s1 + $0x30] sm:$0xff]  ;;  %v35_v11 = vld [vmem:[%s659_s1 + $0x28] sm:$0xff]  ;;  %v34_v12 = vld [vmem:[%s659_s1 + $0x20] sm:$0xff] }
   0x5   :  { %358 = vmatpush3.msra.mxu0 %v44_v1  ;;  %428 = vmatpush3.msra.mxu1 %v44_v1  ;;  %v33_v13 = vld [vmem:[%s659_s1 + $0x18] sm:$0xff]  ;;  %v32_v14 = vld [vmem:[%s659_s1 + $0x10] sm:$0xff]  ;;  %v31_v15 = vld [vmem:[%s659_s1 + $0x8] sm:$0xff] }
   0x6   :  { %359 = vmatprep.subr.mxu0 %v43_v3  ;;  %413 = vmatprep.subr.mxu1 %v43_v3  ;;  %v30_v16 = vld [vmem:[%s659_s1] sm:$0xff]  ;;  %v15_v19 = vld [vmem:[%s660_s0 + $0x8] sm:$0xff]  ;;  %v16_v21 = vld [vmem:[%s660_s0 + $0x10] sm:$0xff] }
   0x7   :  { %360 = vmatpush3.msra.mxu0 %v43_v3  ;;  %429 = vmatpush3.msra.mxu1 %v43_v3  ;;  %v14_v17 = vld [vmem:[%s660_s0] sm:$0xff]  ;;  %v23_v20 = vld [vmem:[%s660_s0 + $0x48] sm:$0xff]  ;;  %v24_v22 = vld [vmem:[%s660_s0 + $0x50] sm:$0xff] }
   0x8   :  { %361 = vmatprep.subr.mxu0 %v42_v4  ;;  %414 = vmatprep.subr.mxu1 %v42_v4  ;;  %v22_v18 = vld [vmem:[%s660_s0 + $0x40] sm:$0xff]  ;;  %v193_v23 = vld [vmem:[%s661_s2 + $0x10] sm:$0xff]  ;;  %v17_v25 = vld [vmem:[%s660_s0 + $0x18] sm:$0xff] }
   0x9   :  { %362 = vmatpush3.msra.mxu0 %v42_v4  ;;  %430 = vmatpush3.msra.mxu1 %v42_v4  ;;  %v191_v24 = vld [vmem:[%s661_s2] sm:$0xff]  ;;  %v25_v26 = vld [vmem:[%s660_s0 + $0x58] sm:$0xff]  ;;  %v192_v30 = vld [vmem:[%s661_s2 + $0x8] sm:$0xff] }
   0xa   :  { %363 = vmatprep.subr.mxu0 %v41_v5  ;;  %415 = vmatprep.subr.mxu1 %v41_v5  ;;  %v18_v27 = vld [vmem:[%s660_s0 + $0x20] sm:$0xff]  ;;  %v194_v29 = vld [vmem:[%s661_s2 + $0x18] sm:$0xff]  ;;  %v19_v31 = vld [vmem:[%s660_s0 + $0x28] sm:$0xff] }
   0xb   :  { %364 = vmatpush3.msra.mxu0 %v41_v5  ;;  %431 = vmatpush3.msra.mxu1 %v41_v5  ;;  %v26_v28 = vld [vmem:[%s660_s0 + $0x60] sm:$0xff]  ;;  %v27_v32 = vld [vmem:[%s660_s0 + $0x68] sm:$0xff]  ;;  %v20_v33 = vld [vmem:[%s660_s0 + $0x30] sm:$0xff] }
   0xc   :  { %365 = vmatprep.subr.mxu0 %v40_v6  ;;  %416 = vmatprep.subr.mxu1 %v40_v6  ;;  %v28_v34 = vld [vmem:[%s660_s0 + $0x70] sm:$0xff]  ;;  %v196_v35 = vld [vmem:[%s661_s2 + $0x28] sm:$0xff]  ;;  %v195_v36 = vld [vmem:[%s661_s2 + $0x20] sm:$0xff] }
   0xd   :  { %366 = vmatpush3.msra.mxu0 %v40_v6  ;;  %432 = vmatpush3.msra.mxu1 %v40_v6  ;;  %v21_v37 = vld [vmem:[%s660_s0 + $0x38] sm:$0xff]  ;;  %v197_v40 = vld [vmem:[%s661_s2 + $0x30] sm:$0xff]  ;;  %v200_v41 = vld [vmem:[%s661_s2 + $0x48] sm:$0xff] }
   0xe   :  { %367 = vmatprep.subr.mxu0 %v39_v7  ;;  %417 = vmatprep.subr.mxu1 %v39_v7  ;;  %v29_v38 = vld [vmem:[%s660_s0 + $0x78] sm:$0xff]  ;;  %v199_v42 = vld [vmem:[%s661_s2 + $0x40] sm:$0xff]  ;;  %v201_v44 = vld [vmem:[%s661_s2 + $0x50] sm:$0xff] }
   0xf   :  { %368 = vmatpush3.msra.mxu0 %v39_v7  ;;  %433 = vmatpush3.msra.mxu1 %v39_v7  ;;  %v198_v39 = vld [vmem:[%s661_s2 + $0x38] sm:$0xff]  ;;  %v204_v45 = vld [vmem:[%s661_s2 + $0x68] sm:$0xff]  ;;  %v203_v46 = vld [vmem:[%s661_s2 + $0x60] sm:$0xff] }
  0x10   :  { %369 = vmatprep.subr.mxu0 %v38_v8  ;;  %418 = vmatprep.subr.mxu1 %v38_v8  ;;  %v202_v43 = vld [vmem:[%s661_s2 + $0x58] sm:$0xff]  ;;  %v205_v48 = vld [vmem:[%s661_s2 + $0x70] sm:$0xff] }
  0x11   :  { %370 = vmatpush3.msra.mxu0 %v38_v8  ;;  %434 = vmatpush3.msra.mxu1 %v38_v8  ;;  %v206_v47 = vld [vmem:[%s661_s2 + $0x78] sm:$0xff] }
  0x12   :  { %371 = vmatprep.subr.mxu0 %v37_v9  ;;  %419 = vmatprep.subr.mxu1 %v37_v9 }
  0x13   :  { %372 = vmatpush3.msra.mxu0 %v37_v9  ;;  %435 = vmatpush3.msra.mxu1 %v37_v9 }
  0x14   :  { %373 = vmatprep.subr.mxu0 %v36_v10  ;;  %420 = vmatprep.subr.mxu1 %v36_v10 }
  0x15   :  { %374 = vmatpush3.msra.mxu0 %v36_v10  ;;  %436 = vmatpush3.msra.mxu1 %v36_v10 }
  0x16   :  { %375 = vmatprep.subr.mxu0 %v35_v11  ;;  %421 = vmatprep.subr.mxu1 %v35_v11 }
  0x17   :  { %376 = vmatpush3.msra.mxu0 %v35_v11  ;;  %437 = vmatpush3.msra.mxu1 %v35_v11 }
  0x18   :  { %377 = vmatprep.subr.mxu0 %v34_v12  ;;  %422 = vmatprep.subr.mxu1 %v34_v12 }
  0x19   :  { %378 = vmatpush3.msra.mxu0 %v34_v12  ;;  %438 = vmatpush3.msra.mxu1 %v34_v12 }
  0x1a   :  { %379 = vmatprep.subr.mxu0 %v33_v13  ;;  %423 = vmatprep.subr.mxu1 %v33_v13 }
  0x1b   :  { %380 = vmatpush3.msra.mxu0 %v33_v13  ;;  %439 = vmatpush3.msra.mxu1 %v33_v13 }
  0x1c   :  { %381 = vmatprep.subr.mxu0 %v32_v14  ;;  %424 = vmatprep.subr.mxu1 %v32_v14 }
  0x1d   :  { %382 = vmatpush3.msra.mxu0 %v32_v14  ;;  %440 = vmatpush3.msra.mxu1 %v32_v14 }
  0x1e   :  { %383 = vmatprep.subr.mxu0 %v31_v15  ;;  %425 = vmatprep.subr.mxu1 %v31_v15 }
  0x1f   :  { %384 = vmatpush3.msra.mxu0 %v31_v15  ;;  %441 = vmatpush3.msra.mxu1 %v31_v15 }
  0x20   :  { %385 = vmatprep.subr.mxu0 %v30_v16  ;;  %426 = vmatprep.subr.mxu1 %v30_v16 }
  0x21   :  { %386 = vmatpush3.msra.mxu0 %v30_v16  ;;  %442 = vmatpush3.msra.mxu1 %v30_v16 }
  0x22   :  { %387 = vmatprep.mubr.f32.mxu0 %v14_v17  ;;  %399 = vmatprep.mubr.f32.mxu1 %v22_v18 }
  0x23   :  { %388 = vmatmul.mubr.f32.vlgmr.msra.gmra.mxu0 %v15_v19  ;;  %400 = vmatmul.mubr.f32.vlgmr.msra.gmra.mxu1 %v23_v20 }
  0x24   :  { %390 = vmatprep.mubr.f32.mxu0 %v16_v21  ;;  %402 = vmatprep.mubr.f32.mxu1 %v24_v22 }
  0x25   :  { %219 = vperm.xlu1 %445, %v193_v23   ;;  %209 = vperm.xlu0 %444, %v191_v24  }
  0x27   :  { %391 = vmatmul.mubr.f32.gmra.mxu0 %v17_v25  ;;  %403 = vmatmul.mubr.f32.gmra.mxu1 %v25_v26 }
  0x28   :  { %393 = vmatprep.mubr.f32.mxu0 %v18_v27  ;;  %405 = vmatprep.mubr.f32.mxu1 %v26_v28 }
  0x29   :  { %224 = vperm.xlu1 %445, %v194_v29   ;;  %214 = vperm.xlu0 %444, %v192_v30  }
  0x2b   :  { %394 = vmatmul.mubr.f32.gmra.mxu0 %v19_v31  ;;  %406 = vmatmul.mubr.f32.gmra.mxu1 %v27_v32 }
  0x2c   :  { %396 = vmatprep.mubr.f32.mxu0 %v20_v33  ;;  %408 = vmatprep.mubr.f32.mxu1 %v28_v34 }
  0x2d   :  { %234 = vperm.xlu1 %445, %v196_v35   ;;  %229 = vperm.xlu0 %444, %v195_v36  }
  0x2f   :  { %397 = vmatmul.mubr.f32.gmra.mxu0 %v21_v37  ;;  %409 = vmatmul.mubr.f32.gmra.mxu1 %v29_v38 }
  0x31   :  { %244 = vperm.xlu1 %445, %v198_v39   ;;  %239 = vperm.xlu0 %444, %v197_v40  }
  0x35   :  { %254 = vperm.xlu1 %445, %v200_v41   ;;  %249 = vperm.xlu0 %444, %v199_v42  }
  0x39   :  { %264 = vperm.xlu1 %445, %v202_v43   ;;  %259 = vperm.xlu0 %444, %v201_v44  }
  0x3d   :  { %274 = vperm.xlu1 %445, %v204_v45   ;;  %269 = vperm.xlu0 %444, %v203_v46  }
  0x41   :  { %284 = vperm.xlu1 %445, %v206_v47   ;;  %279 = vperm.xlu0 %444, %v205_v48  }
  0xa0   :  { %v220_v49 = vpop.permute.xlu1 %219  ;;  %v210_v50 = vpop.permute.xlu0 %209 }
  0xa4   :  { %v225_v51 = vpop.permute.xlu1 %224  ;;  %v215_v52 = vpop.permute.xlu0 %214 }
  0xa8   :  { %v235_v53 = vpop.permute.xlu1 %234  ;;  %v230_v54 = vpop.permute.xlu0 %229 }
  0xac   :  { %v245_v55 = vpop.permute.xlu1 %244  ;;  %v240_v56 = vpop.permute.xlu0 %239 }
  0xb0   :  { %v255_v57 = vpop.permute.xlu1 %254  ;;  %v250_v58 = vpop.permute.xlu0 %249 }
  0xb4   :  { %v265_v59 = vpop.permute.xlu1 %264  ;;  %v260_v62 = vpop.permute.xlu0 %259 }
  0xb8   :  { %v275_v7 = vpop.permute.xlu1 %274  ;;  %v270_v12 = vpop.permute.xlu0 %269 }
  0xbc   :  { %v285_v21 = vpop.permute.xlu1 %284  ;;  %v280_v26 = vpop.permute.xlu0 %279 }
  0xe3   :  { %v389_v60 = vpop.f32.mrf.mxu0  ;;  %v401_v61 = vpop.f32.mrf.mxu1 }
  0xe4   :  { %v288_v63 = vmul.f32 %v389_v60, %v215_v52  ;;  %v296_v0 = vmul.f32 %v401_v61, %v255_v57 }
  0xe5   :  { %v112_v1 = vpop.f32.mrf.mxu0  ;;  %v152_v2 = vpop.f32.mrf.mxu1 }
  0xe6   :  { %304 = vst [vmem:[%s662_s3 + $0x8] sm:$0xff] %v288_v63  ;;  %312 = vst [vmem:[%s662_s3 + $0x48] sm:$0xff] %v296_v0  ;;  %v287_v3 = vmul.f32 %v210_v50, %v112_v1  ;;  %v295_v4 = vmul.f32 %v250_v58, %v152_v2 }
  0xe7   :  { %v392_v5 = vpop.f32.mrf.mxu0  ;;  %v404_v6 = vpop.f32.mrf.mxu1 }
  0xe8   :  { %303 = vst [vmem:[%s662_s3] sm:$0xff] %v287_v3  ;;  %311 = vst [vmem:[%s662_s3 + $0x40] sm:$0xff] %v295_v4  ;;  %v290_v8 = vmul.f32 %v392_v5, %v225_v51  ;;  %v298_v9 = vmul.f32 %v404_v6, %v265_v59 }
  0xe9   :  { %v122_v10 = vpop.f32.mrf.mxu0  ;;  %v162_v11 = vpop.f32.mrf.mxu1 }
  0xea   :  { %306 = vst [vmem:[%s662_s3 + $0x18] sm:$0xff] %v290_v8  ;;  %314 = vst [vmem:[%s662_s3 + $0x58] sm:$0xff] %v298_v9  ;;  %v289_v13 = vmul.f32 %v220_v49, %v122_v10  ;;  %v297_v14 = vmul.f32 %v260_v62, %v162_v11 }
  0xeb   :  { %v395_v15 = vpop.f32.mrf.mxu0  ;;  %v407_v16 = vpop.f32.mrf.mxu1 }
  0xec   :  { %305 = vst [vmem:[%s662_s3 + $0x10] sm:$0xff] %v289_v13  ;;  %313 = vst [vmem:[%s662_s3 + $0x50] sm:$0xff] %v297_v14  ;;  %v292_v17 = vmul.f32 %v395_v15, %v235_v53  ;;  %v300_v18 = vmul.f32 %v407_v16, %v275_v7 }
  0xed   :  { %v132_v19 = vpop.f32.mrf.mxu0  ;;  %v172_v20 = vpop.f32.mrf.mxu1 }
  0xee   :  { %308 = vst [vmem:[%s662_s3 + $0x28] sm:$0xff] %v292_v17  ;;  %316 = vst [vmem:[%s662_s3 + $0x68] sm:$0xff] %v300_v18  ;;  %v291_v22 = vmul.f32 %v230_v54, %v132_v19  ;;  %v299_v23 = vmul.f32 %v270_v12, %v172_v20 }
  0xef   :  { %v398_v24 = vpop.f32.mrf.mxu0  ;;  %v410_v25 = vpop.f32.mrf.mxu1 }
  0xf0   :  { %307 = vst [vmem:[%s662_s3 + $0x20] sm:$0xff] %v291_v22  ;;  %315 = vst [vmem:[%s662_s3 + $0x60] sm:$0xff] %v299_v23  ;;  %v294_v27 = vmul.f32 %v398_v24, %v245_v55  ;;  %v302_v28 = vmul.f32 %v410_v25, %v285_v21 }
  0xf1   :  { %v142_v29 = vpop.f32.mrf.mxu0  ;;  %v182_v30 = vpop.f32.mrf.mxu1 }
  0xf2   :  { %310 = vst [vmem:[%s662_s3 + $0x38] sm:$0xff] %v294_v27  ;;  %318 = vst [vmem:[%s662_s3 + $0x78] sm:$0xff] %v302_v28  ;;  %v293_v31 = vmul.f32 %v240_v56, %v142_v29  ;;  %v301_v32 = vmul.f32 %v280_v26, %v182_v30 }
  0xf4   :  { %309 = vst [vmem:[%s662_s3 + $0x30] sm:$0xff] %v293_v31  ;;  %317 = vst [vmem:[%s662_s3 + $0x70] sm:$0xff] %v301_v32 }

// kernel: gcn_forward.3
= control target key start
LH: loop header
LB: loop body
LE: loop exit
PB: predicated region body
PF: predicated region fallthrough
CT: control target
= control target key end

     0   :  { %v556_v3 = vmov 0   ;;  %s801_s1 = inlined_call_operand.vmem [shape: f32[128,128], index: 1, kind: input, shape index: {}]   ;;  %s802_s0 = inlined_call_operand.vmem [shape: s8[128,128], index: 0, kind: input, shape index: {}]   ;;  %s803_s2 = inlined_call_operand.vmem [shape: f32[128,1], index: 2, kind: input, shape index: {}]   ;;  %s804_s3 = inlined_call_operand.vmem [shape: f32[1,128], index: 3, kind: input, shape index: {}]   ;;  %s805_s4 = inlined_call_operand.vmem [shape: f32[128,128], index: 4, kind: output, shape index: {}]  }
   0x1   :  { %v86_v0 = vld [vmem:[%s801_s1 + $0x70] sm:$0xff]  ;;  %v87_v1 = vld [vmem:[%s801_s1 + $0x78] sm:$0xff]  ;;  %v84_v2 = vld [vmem:[%s801_s1 + $0x60] sm:$0xff]  ;;  %555 = vset.pattern.permute.xlu1 %v556_v3  ;;  %554 = vset.pattern.permute.xlu0 %v556_v3 }
   0x2   :  { %v111_v4 = vpack.c.bf16 %v87_v1, %v86_v0  ;;  %v85_v5 = vld [vmem:[%s801_s1 + $0x68] sm:$0xff]  ;;  %v82_v7 = vld [vmem:[%s801_s1 + $0x50] sm:$0xff]  ;;  %v83_v8 = vld [vmem:[%s801_s1 + $0x58] sm:$0xff] }
   0x3   :  { %v110_v6 = vpack.c.bf16 %v85_v5, %v84_v2  ;;  %v109_v9 = vpack.c.bf16 %v83_v8, %v82_v7  ;;  %v80_v10 = vld [vmem:[%s801_s1 + $0x40] sm:$0xff]  ;;  %v81_v13 = vld [vmem:[%s801_s1 + $0x48] sm:$0xff]  ;;  %v46_v16 = vld [vmem:[%s802_s0 + $0x10] sm:$0x3] }
   0x4   :  { %504 = vmatprep.subr.bf16.mxu0 %v111_v4  ;;  %536 = vmatprep.subr.bf16.mxu1 %v111_v4  ;;  %v38_v11 = vld [vmem:[%s802_s0] sm:$0x3]  ;;  %v39_v12 = vld [vmem:[%s802_s0 + $0x2] sm:$0x3]  ;;  %v47_v17 = vld [vmem:[%s802_s0 + $0x12] sm:$0x3]  ;;  %v62_v18 = vunpack.c.l.s8.bf16 %v46_v16  ;;  %v108_v21 = vpack.c.bf16 %v81_v13, %v80_v10 }
   0x5   :  { %505 = vmatpush3.bf16.msra.mxu0 %v111_v4  ;;  %544 = vmatpush3.bf16.msra.mxu1 %v111_v4  ;;  %v54_v14 = vunpack.c.l.s8.bf16 %v38_v11  ;;  %v55_v15 = vunpack.c.l.s8.bf16 %v39_v12  ;;  %v63_v19 = vunpack.c.l.s8.bf16 %v47_v17  ;;  %v78_v23 = vld [vmem:[%s801_s1 + $0x30] sm:$0xff]  ;;  %v79_v24 = vld [vmem:[%s801_s1 + $0x38] sm:$0xff]  ;;  %v308_v26 = vld [vmem:[%s803_s2] sm:$0xff] }
   0x6   :  { %506 = vmatprep.subr.bf16.mxu0 %v110_v6  ;;  %537 = vmatprep.subr.bf16.mxu1 %v110_v6  ;;  %v310_v25 = vld [vmem:[%s803_s2 + $0x10] sm:$0xff]  ;;  %v311_v27 = vld [vmem:[%s803_s2 + $0x18] sm:$0xff]  ;;  %v107_v28 = vpack.c.bf16 %v79_v24, %v78_v23  ;;  %v76_v29 = vld [vmem:[%s801_s1 + $0x20] sm:$0xff] }
   0x7   :  { %v479_v20 = vcombine.low %v54_v14, %v55_v15  ;;  %v483_v22 = vcombine.low %v62_v18, %v63_v19  ;;  %336 = vperm.xlu1 %555, %v310_v25   ;;  %v77_v30 = vld [vmem:[%s801_s1 + $0x28] sm:$0xff]  ;;  %326 = vperm.xlu0 %554, %v308_v26   ;;  %v74_v34 = vld [vmem:[%s801_s1 + $0x10] sm:$0xff]  ;;  %v75_v35 = vld [vmem:[%s801_s1 + $0x18] sm:$0xff] }
   0x8   :  { %v309_v31 = vld [vmem:[%s803_s2 + $0x8] sm:$0xff]  ;;  %v106_v33 = vpack.c.bf16 %v77_v30, %v76_v29  ;;  %v312_v36 = vld [vmem:[%s803_s2 + $0x20] sm:$0xff]  ;;  %v315_v37 = vld [vmem:[%s803_s2 + $0x38] sm:$0xff]  ;;  %v105_v38 = vpack.c.bf16 %v75_v35, %v74_v34 }
   0x9   :  { %507 = vmatpush3.bf16.msra.mxu0 %v110_v6  ;;  %545 = vmatpush3.bf16.msra.mxu1 %v110_v6  ;;  %v313_v32 = vld [vmem:[%s803_s2 + $0x28] sm:$0xff]  ;;  %v72_v39 = vld [vmem:[%s801_s1] sm:$0xff]  ;;  %v48_v43 = vld [vmem:[%s802_s0 + $0x14] sm:$0x3] }
   0xa   :  { %508 = vmatprep.subr.bf16.mxu0 %v109_v9  ;;  %538 = vmatprep.subr.bf16.mxu1 %v109_v9  ;;  %v73_v40 = vld [vmem:[%s801_s1 + $0x8] sm:$0xff]  ;;  %v40_v41 = vld [vmem:[%s802_s0 + $0x4] sm:$0x3]  ;;  %v41_v42 = vld [vmem:[%s802_s0 + $0x6] sm:$0x3]  ;;  %v64_v54 = vunpack.c.l.s8.bf16 %v48_v43 }
   0xb   :  { %520 = vmatprep.mubr.bf16.mxu0 %v479_v20  ;;  %528 = vmatprep.mubr.bf16.mxu1 %v483_v22  ;;  %v314_v44 = vld [vmem:[%s803_s2 + $0x30] sm:$0xff]  ;;  %v42_v46 = vld [vmem:[%s802_s0 + $0x8] sm:$0x3]  ;;  %v104_v48 = vpack.c.bf16 %v73_v40, %v72_v39  ;;  %v43_v49 = vld [vmem:[%s802_s0 + $0xa] sm:$0x3]  ;;  %v56_v52 = vunpack.c.l.s8.bf16 %v40_v41  ;;  %v57_v53 = vunpack.c.l.s8.bf16 %v41_v42 }
   0xc   :  { %341 = vperm.xlu1 %555, %v311_v27   ;;  %331 = vperm.xlu0 %554, %v309_v31   ;;  %v49_v45 = vld [vmem:[%s802_s0 + $0x16] sm:$0x3]  ;;  %v317_v47 = vld [vmem:[%s803_s2 + $0x48] sm:$0xff]  ;;  %v50_v50 = vld [vmem:[%s802_s0 + $0x18] sm:$0x3]  ;;  %v58_v57 = vunpack.c.l.s8.bf16 %v42_v46  ;;  %v59_v58 = vunpack.c.l.s8.bf16 %v43_v49 }
   0xd   :  { %509 = vmatpush3.bf16.msra.mxu0 %v109_v9  ;;  %546 = vmatpush3.bf16.msra.mxu1 %v109_v9  ;;  %v51_v51 = vld [vmem:[%s802_s0 + $0x1a] sm:$0x3]  ;;  %v65_v55 = vunpack.c.l.s8.bf16 %v49_v45  ;;  %v316_v56 = vld [vmem:[%s803_s2 + $0x40] sm:$0xff]  ;;  %v66_v59 = vunpack.c.l.s8.bf16 %v50_v50  ;;  %v480_v62 = vcombine.low %v56_v52, %v57_v53  ;;  %v44_v0 = vld [vmem:[%s802_s0 + $0xc] sm:$0x3] }
   0xe   :  { %510 = vmatprep.subr.bf16.mxu0 %v108_v21  ;;  %539 = vmatprep.subr.bf16.mxu1 %v108_v21  ;;  %v67_v60 = vunpack.c.l.s8.bf16 %v51_v51  ;;  %v319_v61 = vld [vmem:[%s803_s2 + $0x58] sm:$0xff]  ;;  %v318_v1 = vld [vmem:[%s803_s2 + $0x50] sm:$0xff]  ;;  %v481_v2 = vcombine.low %v58_v57, %v59_v58  ;;  %v45_v4 = vld [vmem:[%s802_s0 + $0xe] sm:$0x3]  ;;  %v60_v8 = vunpack.c.l.s8.bf16 %v44_v0 }
   0xf   :  { %v484_v63 = vcombine.low %v64_v54, %v65_v55  ;;  %v52_v5 = vld [vmem:[%s802_s0 + $0x1c] sm:$0x3]  ;;  %v53_v6 = vld [vmem:[%s802_s0 + $0x1e] sm:$0x3]  ;;  %v321_v7 = vld [vmem:[%s803_s2 + $0x68] sm:$0xff]  ;;  %v61_v9 = vunpack.c.l.s8.bf16 %v45_v4 }
  0x10   :  { %351 = vperm.xlu1 %555, %v313_v32   ;;  %346 = vperm.xlu0 %554, %v312_v36   ;;  %v485_v3 = vcombine.low %v66_v59, %v67_v60  ;;  %v68_v10 = vunpack.c.l.s8.bf16 %v52_v5  ;;  %v69_v11 = vunpack.c.l.s8.bf16 %v53_v6  ;;  %v320_v12 = vld [vmem:[%s803_s2 + $0x60] sm:$0xff]  ;;  %v323_v13 = vld [vmem:[%s803_s2 + $0x78] sm:$0xff]  ;;  %v322_v16 = vld [vmem:[%s803_s2 + $0x70] sm:$0xff] }
  0x11   :  { %511 = vmatpush3.bf16.msra.mxu0 %v108_v21  ;;  %547 = vmatpush3.bf16.msra.mxu1 %v108_v21  ;;  %v482_v14 = vcombine.low %v60_v8, %v61_v9  ;;  %v733_v30 = vld [vmem:[%s804_s3] ss:$0 sm:$0xff] }
  0x12   :  { %512 = vmatprep.subr.bf16.mxu0 %v107_v28  ;;  %540 = vmatprep.subr.bf16.mxu1 %v107_v28  ;;  %v486_v15 = vcombine.low %v68_v10, %v69_v11 }
  0x14   :  { %361 = vperm.xlu1 %555, %v315_v37   ;;  %356 = vperm.xlu0 %554, %v314_v44  }
  0x15   :  { %513 = vmatpush3.bf16.msra.mxu0 %v107_v28  ;;  %548 = vmatpush3.bf16.msra.mxu1 %v107_v28 }
  0x16   :  { %514 = vmatprep.subr.bf16.mxu0 %v106_v33  ;;  %541 = vmatprep.subr.bf16.mxu1 %v106_v33 }
  0x18   :  { %371 = vperm.xlu1 %555, %v317_v47   ;;  %366 = vperm.xlu0 %554, %v316_v56  }
  0x19   :  { %515 = vmatpush3.bf16.msra.mxu0 %v106_v33  ;;  %549 = vmatpush3.bf16.msra.mxu1 %v106_v33 }
  0x1a   :  { %516 = vmatprep.subr.bf16.mxu0 %v105_v38  ;;  %542 = vmatprep.subr.bf16.mxu1 %v105_v38 }
  0x1c   :  { %381 = vperm.xlu1 %555, %v319_v61   ;;  %376 = vperm.xlu0 %554, %v318_v1  }
  0x1d   :  { %517 = vmatpush3.bf16.msra.mxu0 %v105_v38  ;;  %550 = vmatpush3.bf16.msra.mxu1 %v105_v38 }
  0x1e   :  { %518 = vmatprep.subr.bf16.mxu0 %v104_v48  ;;  %543 = vmatprep.subr.bf16.mxu1 %v104_v48 }
  0x20   :  { %391 = vperm.xlu1 %555, %v321_v7   ;;  %386 = vperm.xlu0 %554, %v320_v12  }
  0x21   :  { %519 = vmatpush3.bf16.msra.mxu0 %v104_v48  ;;  %551 = vmatpush3.bf16.msra.mxu1 %v104_v48 }
  0x24   :  { %521 = vmatmul.mubr.bf16.vlgmr.msra.gmra.mxu0 %v480_v62  ;;  %529 = vmatmul.mubr.bf16.vlgmr.msra.gmra.mxu1 %v484_v63 }
  0x25   :  { %524 = vmatprep.mubr.bf16.mxu0 %v481_v2  ;;  %532 = vmatprep.mubr.bf16.mxu1 %v485_v3 }
  0x26   :  { %401 = vperm.xlu1 %555, %v323_v13   ;;  %396 = vperm.xlu0 %554, %v322_v16  }
  0x2c   :  { %525 = vmatmul.mubr.bf16.gmra.mxu0 %v482_v14  ;;  %533 = vmatmul.mubr.bf16.gmra.mxu1 %v486_v15 }
  0x82   :  { %v327_v17 = vpop.permute.xlu0 %326  ;;  %v337_v18 = vpop.permute.xlu1 %336 }
  0x87   :  { %v332_v19 = vpop.permute.xlu0 %331  ;;  %v342_v20 = vpop.permute.xlu1 %341 }
  0x8b   :  { %v347_v21 = vpop.permute.xlu0 %346  ;;  %v726_v22 = vpop.permute.xlu1 %351 }
  0x8f   :  { %v357_v23 = vpop.permute.xlu0 %356  ;;  %v728_v24 = vpop.permute.xlu1 %361 }
  0x93   :  { %v367_v25 = vpop.permute.xlu0 %366  ;;  %v372_v26 = vpop.permute.xlu1 %371 }
  0x97   :  { %v377_v27 = vpop.permute.xlu0 %376  ;;  %v382_v33 = vpop.permute.xlu1 %381 }
  0x9b   :  { %v387_v34 = vpop.permute.xlu0 %386  ;;  %v392_v53 = vpop.permute.xlu1 %391 }
  0xa1   :  { %v397_v54 = vpop.permute.xlu0 %396  ;;  %v402_v15 = vpop.permute.xlu1 %401 }
  0xe4   :  { %v522_v28 = vpop.f32.mrf.mxu0  ;;  %v530_v29 = vpop.f32.mrf.mxu1 }
  0xe5   :  { %v406_v35 = vmul.f32 %v522_v28, %v337_v18  ;;  %v414_v36 = vmul.f32 %v530_v29, %v377_v27 }
  0xe6   :  { %v194_v31 = vpop.f32.mrf.mxu0  ;;  %v226_v32 = vpop.f32.mrf.mxu1 }
  0xe7   :  { %v429_v39 = vadd.f32 %v733_v30, %v406_v35  ;;  %v437_v40 = vadd.f32 %v733_v30, %v414_v36  ;;  %v404_v41 = vmul.f32 %v327_v17, %v194_v31  ;;  %v412_v42 = vmul.f32 %v367_v25, %v226_v32 }
  0xe8   :  { %v523_v37 = vpop.f32.mrf.mxu0  ;;  %v531_v38 = vpop.f32.mrf.mxu1 }
  0xe9   :  { %v445_v45 = vmax.f32 %v429_v39, 0.0  ;;  %v453_v46 = vmax.f32 %v437_v40, 0.0  ;;  %v427_v47 = vadd.f32 %v733_v30, %v404_v41  ;;  %v435_v48 = vadd.f32 %v733_v30, %v412_v42 }
  0xea   :  { %v197_v43 = vpop.f32.mrf.mxu0  ;;  %v229_v44 = vpop.f32.mrf.mxu1  ;;  %v407_v49 = vmul.f32 %v523_v37, %v342_v20  ;;  %v415_v50 = vmul.f32 %v531_v38, %v382_v33 }
  0xeb   :  { %461 = vst [vmem:[%s805_s4 + $0x10] sm:$0xff] %v445_v45  ;;  %469 = vst [vmem:[%s805_s4 + $0x50] sm:$0xff] %v453_v46  ;;  %v443_v55 = vmax.f32 %v427_v47, 0.0  ;;  %v451_v56 = vmax.f32 %v435_v48, 0.0  ;;  %v405_v59 = vmul.f32 %v332_v19, %v197_v43  ;;  %v413_v60 = vmul.f32 %v372_v26, %v229_v44 }
  0xec   :  { %v526_v51 = vpop.f32.mrf.mxu0  ;;  %v534_v52 = vpop.f32.mrf.mxu1  ;;  %v430_v57 = vadd.f32 %v733_v30, %v407_v49  ;;  %v438_v58 = vadd.f32 %v733_v30, %v415_v50 }
  0xed   :  { %459 = vst [vmem:[%s805_s4] sm:$0xff] %v443_v55  ;;  %467 = vst [vmem:[%s805_s4 + $0x40] sm:$0xff] %v451_v56  ;;  %v410_v63 = vmul.f32 %v526_v51, %v357_v23  ;;  %v418_v0 = vmul.f32 %v534_v52, %v397_v54  ;;  %v428_v3 = vadd.f32 %v733_v30, %v405_v59 }
  0xee   :  { %v210_v61 = vpop.f32.mrf.mxu0  ;;  %v242_v62 = vpop.f32.mrf.mxu1  ;;  %v446_v1 = vmax.f32 %v430_v57, 0.0  ;;  %v454_v2 = vmax.f32 %v438_v58, 0.0  ;;  %v436_v4 = vadd.f32 %v733_v30, %v413_v60 }
  0xef   :  { %v433_v7 = vadd.f32 %v733_v30, %v410_v63  ;;  %v441_v8 = vadd.f32 %v733_v30, %v418_v0  ;;  %v408_v9 = vmul.f32 %v347_v21, %v210_v61  ;;  %v416_v10 = vmul.f32 %v387_v34, %v242_v62 }
  0xf0   :  { %v527_v5 = vpop.f32.mrf.mxu0  ;;  %v535_v6 = vpop.f32.mrf.mxu1  ;;  %462 = vst [vmem:[%s805_s4 + $0x18] sm:$0xff] %v446_v1  ;;  %470 = vst [vmem:[%s805_s4 + $0x58] sm:$0xff] %v454_v2  ;;  %v444_v11 = vmax.f32 %v428_v3, 0.0  ;;  %v452_v12 = vmax.f32 %v436_v4, 0.0 }
  0xf1   :  { %v449_v16 = vmax.f32 %v433_v7, 0.0  ;;  %v457_v17 = vmax.f32 %v441_v8, 0.0  ;;  %v431_v18 = vadd.f32 %v733_v30, %v408_v9  ;;  %v439_v19 = vadd.f32 %v733_v30, %v416_v10 }
  0xf2   :  { %v213_v13 = vpop.f32.mrf.mxu0  ;;  %v245_v14 = vpop.f32.mrf.mxu1  ;;  %460 = vst [vmem:[%s805_s4 + $0x8] sm:$0xff] %v444_v11  ;;  %468 = vst [vmem:[%s805_s4 + $0x48] sm:$0xff] %v452_v12  ;;  %v411_v20 = vmul.f32 %v527_v5, %v728_v24  ;;  %v419_v21 = vmul.f32 %v535_v6, %v402_v15 }
  0xf3   :  { %465 = vst [vmem:[%s805_s4 + $0x30] sm:$0xff] %v449_v16  ;;  %473 = vst [vmem:[%s805_s4 + $0x70] sm:$0xff] %v457_v17  ;;  %v447_v23 = vmax.f32 %v431_v18, 0.0  ;;  %v455_v25 = vmax.f32 %v439_v19, 0.0  ;;  %v409_v28 = vmul.f32 %v726_v22, %v213_v13  ;;  %v417_v29 = vmul.f32 %v392_v53, %v245_v14 }
  0xf4   :  { %v434_v26 = vadd.f32 %v733_v30, %v411_v20  ;;  %v442_v27 = vadd.f32 %v733_v30, %v419_v21 }
  0xf5   :  { %463 = vst [vmem:[%s805_s4 + $0x20] sm:$0xff] %v447_v23  ;;  %471 = vst [vmem:[%s805_s4 + $0x60] sm:$0xff] %v455_v25  ;;  %v432_v32 = vadd.f32 %v733_v30, %v409_v28  ;;  %v440_v33 = vadd.f32 %v733_v30, %v417_v29 }
  0xf6   :  { %v450_v24 = vmax.f32 %v434_v26, 0.0  ;;  %v458_v31 = vmax.f32 %v442_v27, 0.0 }
  0xf7   :  { %v448_v22 = vmax.f32 %v432_v32, 0.0  ;;  %v456_v34 = vmax.f32 %v440_v33, 0.0 }
  0xf8   :  { %466 = vst [vmem:[%s805_s4 + $0x38] sm:$0xff] %v450_v24  ;;  %474 = vst [vmem:[%s805_s4 + $0x78] sm:$0xff] %v458_v31 }
  0xf9   :  { %464 = vst [vmem:[%s805_s4 + $0x28] sm:$0xff] %v448_v22  ;;  %472 = vst [vmem:[%s805_s4 + $0x68] sm:$0xff] %v456_v34 }

</bundles_post_ra>
